<compile_context>
chip_gen: v6e
topology: v6e:2x2x1
jax: 0.10.0
libtpu: 0.0.40
codegen_flags: <defaults>
</compile_context>

<pallas_src>
import functools

import jax
import jax.numpy as jnp
from jax.experimental import pallas as pl
from jax.experimental.pallas import tpu as pltpu


def _rmsnorm_swish_gate_kernel(x_ref, o_ref, w_ref, y_ref, *, eps):
    x = x_ref[...]                                   # (rt, N) native dtype
    xf = x.astype(jnp.float32)

    # RMS statistics in f32 (row-wise reduction over the hidden dim).
    var = jnp.mean(xf * xf, axis=-1, keepdims=True)
    rstd = jax.lax.rsqrt(var + eps)                  # EUP

    if x_ref.dtype == jnp.float32:
        o = o_ref[...].astype(jnp.float32)
        w = w_ref[...].astype(jnp.float32)
        y = (xf * rstd) * w
        y = y * o * jax.nn.sigmoid(o)
    else:
        # Low-precision fast path (bf16/fp16): gate arithmetic in the native
        # dtype, only the reduction + rsqrt above are in f32.
        cd = x_ref.dtype
        o = o_ref[...]
        w = w_ref[...].astype(cd)
        y = (x * rstd.astype(cd)) * w
        y = y * o * jax.nn.sigmoid(o)

    y_ref[...] = y.astype(y_ref.dtype)


def _round_up(v, m):
    return ((v + m - 1) // m) * m


def _sublane_multiple(dtype):
    itemsize = jnp.dtype(dtype).itemsize
    return {4: 8, 2: 16, 1: 32}.get(itemsize, 8)


def _choose_row_tile(M, N, dtype, requested=None):
    """Pick a row tile: big enough to hide per-step overhead, small enough to
    fit comfortably in VMEM on every chip (v7x has only 64 MiB)."""
    sub = _sublane_multiple(dtype)
    itemsize = jnp.dtype(dtype).itemsize
    if requested is not None:
        rt = max(sub, (int(requested) // sub) * sub)
    else:
        # Per-row VMEM cost: x/o/y double-buffered in native dtype plus ~3 live
        # f32 temporaries for the block being computed.
        bytes_per_row = 2 * 3 * N * itemsize + 3 * N * 4
        budget = 40 << 20                      # conservative: fits v7x 64 MiB
        rt = budget // max(1, bytes_per_row)
        rt = max(sub, min(1024, (rt // sub) * sub))
    # No point tiling past the (sublane-rounded) number of rows.
    rt = min(rt, _round_up(M, sub))
    return int(rt)


def fused_rmsnorm_swish_gate(x, o, weight, eps=1e-5, row_tile=None):
    """x, o: (..., hidden); weight: (hidden,). Returns same shape/dtype as x."""
    assert x.shape == o.shape
    orig_shape = x.shape
    N = x.shape[-1]
    x2 = x.reshape(-1, N)
    o2 = o.reshape(-1, N)
    M = x2.shape[0]
    itemsize = jnp.dtype(x.dtype).itemsize

    rt = _choose_row_tile(M, N, x.dtype, row_tile)
    grid = (pl.cdiv(M, rt),)

    w2 = weight.reshape(1, N)

    kernel = functools.partial(_rmsnorm_swish_gate_kernel, eps=float(eps))

    # Scoped-VMEM budget for the chosen tile: double-buffered native-dtype
    # blocks for x/o/y + f32 temporaries + weight, with headroom. Capped at
    # 48 MiB so it stays inside v7x's 64 MiB physical VMEM.
    need = 2 * 3 * rt * N * itemsize + 4 * rt * N * 4 + 2 * N * 4
    vmem_limit = int(min(48 << 20, max(32 << 20, need * 5 // 4)))

    cost = pl.CostEstimate(
        flops=10 * M * N,
        transcendentals=M * N,                      # sigmoid + rsqrt
        bytes_accessed=3 * M * N * itemsize + N * 4,
    )

    y = pl.pallas_call(
        kernel,
        out_shape=jax.ShapeDtypeStruct((M, N), x.dtype),
        grid_spec=pltpu.PrefetchScalarGridSpec(
            num_scalar_prefetch=0,
            grid=grid,
            in_specs=[
                pl.BlockSpec((rt, N), lambda i: (i, 0)),
                pl.BlockSpec((rt, N), lambda i: (i, 0)),
                # Constant index_map -> weight block stays resident in VMEM.
                pl.BlockSpec((1, N), lambda i: (0, 0)),
            ],
            out_specs=pl.BlockSpec((rt, N), lambda i: (i, 0)),
        ),
        compiler_params=pltpu.CompilerParams(
            dimension_semantics=("parallel",),
            vmem_limit_bytes=vmem_limit,
        ),
        cost_estimate=cost,
    )(x2, o2, w2)

    return y.reshape(orig_shape)


class FusedRMSNormSwishGate:
    """JAX/Pallas equivalent of the PyTorch FusedRMSNormSwishGate module."""

    def __init__(self, hidden_size, elementwise_affine=True, eps=1e-5):
        self.hidden_size = hidden_size
        self.elementwise_affine = elementwise_affine
        self.eps = eps
        # nn.Parameter(torch.ones(hidden_size)); when elementwise_affine is
        # False the PyTorch kernel skips the weight multiply, which is
        # equivalent to multiplying by ones.
        self.weight = jnp.ones((hidden_size,), dtype=jnp.float32)

    def __call__(self, x, o):
        # TODO(synk): residual / prenorm paths and the backward pass are not
        # exercised by the module defaults and are not implemented here.
        return fused_rmsnorm_swish_gate(x, o, self.weight, eps=self.eps)


def _reference(x, o, weight, eps):
    xf = x.astype(jnp.float32)
    of = o.astype(jnp.float32)
    rstd = jax.lax.rsqrt(jnp.mean(xf * xf, axis=-1, keepdims=True) + eps)
    y = xf * rstd * weight.astype(jnp.float32)
    y = y * of * jax.nn.sigmoid(of)
    return y.astype(x.dtype)


if __name__ == "__main__":
    key = jax.random.PRNGKey(0)
    k1, k2 = jax.random.split(key)

    batch, seq, hidden = 2, 8, 32
    module = FusedRMSNormSwishGate(hidden, elementwise_affine=True, eps=1e-5)

    # f32 path (exact f32 math -> tight tolerance)
    x = jax.random.normal(k1, (batch, seq, hidden), dtype=jnp.float32)
    o = jax.random.normal(k2, (batch, seq, hidden), dtype=jnp.float32)
    y = jax.block_until_ready(module(x, o))
    y_ref = _reference(x, o, module.weight, module.eps)
    assert y.shape == x.shape and y.dtype == x.dtype
    assert jnp.allclose(y, y_ref, atol=1e-5, rtol=1e-5)

    # bf16 fast path (gate math in bf16 -> looser tolerance)
    xb = x.astype(jnp.bfloat16)
    ob = o.astype(jnp.bfloat16)
    yb = jax.block_until_ready(module(xb, ob))
    yb_ref = _reference(xb, ob, module.weight, module.eps)
    assert yb.shape == xb.shape and yb.dtype == jnp.bfloat16
    assert jnp.allclose(yb.astype(jnp.float32), yb_ref.astype(jnp.float32),
                        atol=5e-2, rtol=5e-2)

    print("KERNEL_OK")
</pallas_src>

<mosaic_0001>
module attributes {stable_mosaic.version = 11 : i64} {
  func.func @_rmsnorm_swish_gate_kernel(%arg0: i32, %arg1: memref<16x32xf32, #tpu.memory_space<vmem>>, %arg2: memref<16x32xf32, #tpu.memory_space<vmem>>, %arg3: memref<1x32xf32, #tpu.memory_space<vmem>>, %arg4: memref<16x32xf32, #tpu.memory_space<vmem>>) attributes {dimension_semantics = [#tpu.dimension_semantics<parallel>], iteration_bounds = array<i64: 1>, scalar_prefetch = 0 : i64, scratch_operands = 0 : i64, tpu.core_type = #tpu.core_type<tc>, window_params = [{transform_indices = @transform_0, window_bounds = array<i64: 16, 32>}, {transform_indices = @transform_1, window_bounds = array<i64: 16, 32>}, {pipeline_mode = #tpu.pipeline_mode<synchronous>, transform_indices = @transform_2, window_bounds = array<i64: 1, 32>}, {transform_indices = @transform_3, window_bounds = array<i64: 16, 32>}]} {
    %c0 = arith.constant 0 : index
    %c0_0 = arith.constant 0 : index
    %0 = vector.load %arg1[%c0, %c0_0] : memref<16x32xf32, #tpu.memory_space<vmem>>, vector<16x32xf32>
    %1 = arith.mulf %0, %0 : vector<16x32xf32>
    %cst = arith.constant dense<0.000000e+00> : vector<16xf32>
    %2 = vector.multi_reduction <add>, %1, %cst [1] : vector<16x32xf32> to vector<16xf32>
    %3 = vector.shape_cast %2 : vector<16xf32> to vector<16x1xf32>
    %cst_1 = arith.constant 3.200000e+01 : f32
    %4 = vector.broadcast %cst_1 : f32 to vector<16x1xf32>
    %5 = arith.divf %3, %4 : vector<16x1xf32>
    %cst_2 = arith.constant 9.99999974E-6 : f32
    %6 = vector.broadcast %cst_2 : f32 to vector<16x1xf32>
    %7 = arith.addf %5, %6 : vector<16x1xf32>
    %8 = math.rsqrt %7 : vector<16x1xf32>
    %c0_3 = arith.constant 0 : index
    %c0_4 = arith.constant 0 : index
    %9 = vector.load %arg2[%c0_3, %c0_4] : memref<16x32xf32, #tpu.memory_space<vmem>>, vector<16x32xf32>
    %c0_5 = arith.constant 0 : index
    %c0_6 = arith.constant 0 : index
    %10 = vector.load %arg3[%c0_5, %c0_6] : memref<1x32xf32, #tpu.memory_space<vmem>>, vector<1x32xf32>
    %11 = vector.broadcast %8 : vector<16x1xf32> to vector<16x32xf32>
    %12 = arith.mulf %0, %11 : vector<16x32xf32>
    %13 = vector.broadcast %10 : vector<1x32xf32> to vector<16x32xf32>
    %14 = arith.mulf %12, %13 : vector<16x32xf32>
    %15 = arith.mulf %14, %9 : vector<16x32xf32>
    %16 = arith.negf %9 : vector<16x32xf32>
    %17 = math.exp %16 : vector<16x32xf32>
    %cst_7 = arith.constant 1.000000e+00 : f32
    %18 = vector.broadcast %cst_7 : f32 to vector<16x32xf32>
    %19 = arith.addf %18, %17 : vector<16x32xf32>
    %20 = arith.divf %18, %19 : vector<16x32xf32>
    %21 = arith.mulf %15, %20 : vector<16x32xf32>
    %c0_8 = arith.constant 0 : index
    %c0_9 = arith.constant 0 : index
    %22 = vector.load %arg4[%c0_8, %c0_9] : memref<16x32xf32, #tpu.memory_space<vmem>>, vector<16x32xf32>
    tpu.vector_store %arg4[%c0_8, %c0_9], %21 {strides = array<i32>} : memref<16x32xf32, #tpu.memory_space<vmem>>, vector<16x32xf32>,
    return
  }
  func.func @transform_0(%arg0: i32) -> (i32, i32) {
    %c0_i32 = arith.constant 0 : i32
    %c0_i32_0 = arith.constant 0 : i32
    return %arg0, %c0_i32 : i32, i32
  }
  func.func @transform_1(%arg0: i32) -> (i32, i32) {
    %c0_i32 = arith.constant 0 : i32
    %c0_i32_0 = arith.constant 0 : i32
    return %arg0, %c0_i32 : i32, i32
  }
  func.func @transform_2(%arg0: i32) -> (i32, i32) {
    %c0_i32 = arith.constant 0 : i32
    %c0_i32_0 = arith.constant 0 : i32
    %c0_i32_1 = arith.constant 0 : i32
    return %c0_i32, %c0_i32_0 : i32, i32
  }
  func.func @transform_3(%arg0: i32) -> (i32, i32) {
    %c0_i32 = arith.constant 0 : i32
    %c0_i32_0 = arith.constant 0 : i32
    return %arg0, %c0_i32 : i32, i32
  }
}

</mosaic_0001>

<bundles_post_ra>
// kernel: tpu_custom_call.1
= control target key start
LH: loop header
LB: loop body
LE: loop exit
PB: predicated region body
PF: predicated region fallthrough
CT: control target
= control target key end

     0   :  { %8 = vsyncpa [#allocation3], 0  ;;  %s246_s0 = inlined_call_operand.hbm [shape: f32[16,32], index: 0, kind: input, shape index: {}]   ;;  %s247_s1 = inlined_call_operand.hbm [shape: f32[16,32], index: 1, kind: input, shape index: {}]   ;;  %s248_s2 = inlined_call_operand.vmem [shape: f32[1,32], index: 2, kind: input, shape index: {}]   ;;  %s249_s3 = inlined_call_operand.hbm [shape: f32[16,32], index: 3, kind: output, shape index: {}]  }
   0x1   :  { %9 = vsyncpa [#allocation6], 0 }
   0x2   :  { %10 = vsyncpa [#allocation4], 0  ;;  %s196_s12 = smov [#allocation2]  }
   0x3   :  { %s16_s13 = sshll.u32 %s196_s12, 4  ;;  %s17_s13 = int_to_ptr.vmem [resolvable:$true] %s16_s13 }
   0x4   :  { %s138_s14 = scalar_lea.vmem %s17_s13, 256  ;;  %p143_p1 = scmp.lt.s32.totalorder %s17_s13, %s17_s13 }
   0x5   :  { %p139_p0 = scmp.ne.s32.totalorder %s17_s13, %s138_s14  ;;  %p144_p2 = scmp.lt.s32.totalorder %s138_s14, %s138_s14 }
   0x7   :  { %p145_p3 = por %p144_p2, %p143_p1 }
   0x9   :  { %p146_p4 = pnand %p145_p3, %p139_p0 }
   0xb   :  { %149 = shalt.err (!%p146_p4)
}
   0xc   :  { %s197_s15 = smov 128   ;;  %s198_s16 = smov 8  }
   0xd   :  { %22 = dma.hbm_to_vmem [thread:$0]  %s246_s0, 256, %s17_s13, [#allocation3], %s197_s15, %s197_s15, %s198_s16  }
   0xe   :  { %s199_s19 = smov [#allocation5]  }
   0xf   :  { %s28_s20 = sshll.u32 %s199_s19, 4  ;;  %s29_s20 = int_to_ptr.vmem [resolvable:$true] %s28_s20 }
  0x10   :  { %s158_s21 = scalar_lea.vmem %s29_s20, 256  ;;  %p163_p6 = scmp.lt.s32.totalorder %s29_s20, %s29_s20 }
  0x11   :  { %p159_p5 = scmp.ne.s32.totalorder %s29_s20, %s158_s21  ;;  %p164_p7 = scmp.lt.s32.totalorder %s158_s21, %s158_s21 }
  0x13   :  { %p165_p8 = por %p164_p7, %p163_p6 }
  0x15   :  { %p166_p9 = pnand %p165_p8, %p159_p5 }
  0x17   :  { %169 = shalt.err (!%p166_p9)
}
  0x18   :  { %34 = dma.hbm_to_vmem [thread:$0]  %s247_s1, 256, %s29_s20, [#allocation6], %s197_s15, %s197_s15, %s198_s16  }
  0x19   :  { %190 = dma.done.wait [#allocation3], 256  }
  0x1a   :  { %191 = vsyncadd [#allocation3], 4294967040 }
  0x1b   :  { %192 = dma.done.wait [#allocation6], 256  }
  0x1c   :  { %193 = vsyncadd [#allocation6], 4294967040  ;;  %v43_v0 = vld [vmem:[#allocation2] sm:$0xff]  ;;  %vm47_vm0 = vcmask 261120   ;;  %v44_v1 = vld [vmem:[#allocation2 + $0x8] sm:$0xff]  ;;  %s200_s24 = smov [#allocation7]  }
  0x1d   :  { %v45_v2 = vmul.f32 %v43_v0, %v43_v0  ;;  %v46_v3 = vmul.f32 %v44_v1, %v44_v1  ;;  %v61_v6 = vld [vmem:[#allocation5] sm:$0xff]  ;;  %v62_v8 = vld [vmem:[#allocation5 + $0x8] sm:$0xff]  ;;  %v110_v21 = vld [vmem:[%s248_s2] ss:$0 sm:$0xff]  ;;  %s97_s25 = sshll.u32 %s200_s24, 4  ;;  %s98_s25 = int_to_ptr.vmem [resolvable:$true] %s97_s25 }
  0x1e   :  { %v111_v7 = vmul.f32 -1.442695, %v61_v6  ;;  %v112_v9 = vmul.f32 -1.442695, %v62_v8  ;;  %s170_s26 = scalar_lea.vmem %s98_s25, 256  ;;  %p175_p11 = scmp.lt.s32.totalorder %s98_s25, %s98_s25 }
  0x1f   :  { %v48_v4 = vsel %vm47_vm0, %v45_v2, 0.0  ;;  %v51_v5 = vsel %vm47_vm0, %v46_v3, 0.0  ;;  %p171_p10 = scmp.ne.s32.totalorder %s98_s25, %s170_s26  ;;  %p176_p12 = scmp.lt.s32.totalorder %s170_s26, %s170_s26 }
  0x20   :  { %49 = vadd.xlane.f32.xlu0 %v48_v4  ;;  %118 = vpow2.f32 %v111_v7 }
  0x21   :  { %120 = vpow2.f32 %v112_v9  ;;  %p177_p13 = por %p176_p12, %p175_p11 }
  0x23   :  { %p178_p0 = pnand %p177_p13, %p171_p10 }
  0x24   :  { %52 = vadd.xlane.f32.xlu0 %v51_v5 }
  0x2d   :  { %v119_v11 = vpop.eup %118 }
  0x2e   :  { %v82_v15 = vadd.f32 1.0, %v119_v11  ;;  %v121_v17 = vpop.eup %120 }
  0x2f   :  { %v83_v19 = vadd.f32 1.0, %v121_v17 }
  0xa9   :  { %v50_v10 = vpop.xlane.xlu0 %49 }
  0xaa   :  { %v55_v12 = vmul.f32 0.03125, %v50_v10 }
  0xac   :  { %v57_v13 = vadd.f32 1e-05, %v55_v12 }
  0xad   :  { %v53_v14 = vpop.xlane.xlu0 %52 }
  0xae   :  { %122 = vrsqrt.f32 %v57_v13  ;;  %v56_v16 = vmul.f32 0.03125, %v53_v14 }
  0xaf   :  { %124 = vrcp.f32 %v82_v15 }
  0xb0   :  { %v58_v18 = vadd.f32 1e-05, %v56_v16 }
  0xb2   :  { %126 = vrsqrt.f32 %v58_v18 }
  0xb3   :  { %128 = vrcp.f32 %v83_v19 }
  0xbb   :  { %v123_v20 = vpop.eup %122 }
  0xbc   :  { %v64_v22 = vmul.f32 %v123_v20, %v43_v0  ;;  %v125_v23 = vpop.eup %124 }
  0xbe   :  { %v72_v24 = vmul.f32 %v110_v21, %v64_v22 }
  0xbf   :  { %v127_v25 = vpop.eup %126 }
  0xc0   :  { %v65_v26 = vmul.f32 %v127_v25, %v44_v1  ;;  %v74_v27 = vmul.f32 %v72_v24, %v61_v6  ;;  %v129_v30 = vpop.eup %128 }
  0xc2   :  { %v73_v28 = vmul.f32 %v110_v21, %v65_v26  ;;  %v88_v29 = vmul.f32 %v125_v23, %v74_v27 }
  0xc4   :  { %v75_v31 = vmul.f32 %v73_v28, %v62_v8  ;;  %90 = vst.msk [vmem:[#allocation7] sm:$0xff] %vm47_vm0, %v88_v29 }
  0xc6   :  { %v89_v32 = vmul.f32 %v129_v30, %v75_v31 }
  0xc8   :  { %91 = vst.msk [vmem:[#allocation7 + $0x8] sm:$0xff] %vm47_vm0, %v89_v32 }
  0xc9   :  { %181 = shalt.err (!%p178_p0)
}
  0xca   :  { %103 = dma.vmem_to_hbm [thread:$0]  %s98_s25, 256, %s249_s3, [#allocation4], %s197_s15, %s197_s15, %s198_s16  }
  0xcb   :  { %194 = dma.done.wait [#allocation4], 256  }
  0xcc   :  { %195 = vsyncadd [#allocation4], 4294967040 }
  0xcd   :  { %107 = vsyncpa [#allocation3], 1 }
  0xce   :  { %108 = vsyncpa [#allocation6], 1 }
  0xcf   :  { %109 = vsyncpa [#allocation4], 1 }

</bundles_post_ra>
